<compile_context>
chip_gen: v7x
topology: tpu7x:2x2x1
jax: 0.10.0
libtpu: 0.0.40
codegen_flags: <defaults>
</compile_context>

<pallas_src>
import functools

import numpy as np
import jax
import jax.numpy as jnp
from jax.experimental import pallas as pl
from jax.experimental.pallas import tpu as pltpu


# ----------------------------------------------------------------------------
# Helpers
# ----------------------------------------------------------------------------

def _round_up(x, m):
    return ((x + m - 1) // m) * m


@functools.lru_cache(maxsize=1)
def _vmem_limit_and_budget():
    """Scoped-VMEM limit to request and the byte budget for double-buffered input tiles."""
    cap = 64 * 1024 * 1024                       # conservative (v7x per-TC VMEM)
    try:
        info = pltpu.get_tpu_info()
        cap = int(getattr(info, "vmem_capacity_bytes", cap)) or cap
    except Exception:
        pass
    limit = int(min(cap * 3 // 4, 96 * 1024 * 1024))
    budget = int(limit * 0.55)
    return limit, budget


def _pack_partials(vals):
    """Place scalar partial sums at (row j, lane 0) of an (8,128) f32 block.

    Keeps the output store lane/sublane dense (unmasked vst) and makes the
    per-tile partials trivially reducible in the wrapper with one jnp.sum.
    """
    sub = jax.lax.broadcasted_iota(jnp.int32, (8, 128), 0)
    lane = jax.lax.broadcasted_iota(jnp.int32, (8, 128), 1)
    first = lane == 0
    blk = jnp.zeros((8, 128), jnp.float32)
    for j, v in enumerate(vals):
        blk = jnp.where(jnp.logical_and(sub == j, first), v, blk)
    return blk


def _robust_loss(x, a, c):
    # Reference-only helper (mirrors the PyTorch robust_loss()).
    abs_a_sub_2 = abs(a - 2.0)
    x = x / c
    x = x * x / abs_a_sub_2 + 1.0
    x = jnp.exp((a / 2.0) * jnp.log(x))
    x = x - 1.0
    return x * abs_a_sub_2 / a


# ----------------------------------------------------------------------------
# Pallas kernels
# ----------------------------------------------------------------------------

def _fused_level_kernel(*refs, max_disp, a_thresh, use_a, b_thresh, c1, c2,
                        inv_c, inv_abs_a2, half_a, rl_scale,
                        has_slant, has_conf):
    """Fused scale / slant / confidence partial-sum kernel for one H tile.

    Inputs (in order): pred (B,T,W), target (B,T,W),
                       [slant (B,2,T,W), dxygt (B,2,T,W)] if has_slant,
                       [conf (B,T,W)] if has_conf.
    Output: (8,128) block; rows 0..5 @ lane 0 hold
            scale_num, scale_den, slant_num, slant_den, conf_num, conf_den.
    """
    idx = 0
    pred_ref = refs[idx]; idx += 1
    target_ref = refs[idx]; idx += 1
    slant_ref = dxygt_ref = conf_ref = None
    if has_slant:
        slant_ref = refs[idx]; idx += 1
        dxygt_ref = refs[idx]; idx += 1
    if has_conf:
        conf_ref = refs[idx]; idx += 1
    out_ref = refs[idx]

    pred = pred_ref[...]
    tgt = target_ref[...]
    diff = jnp.abs(pred - tgt)
    maskf = jnp.logical_and(tgt < max_disp, tgt > 0.001).astype(jnp.float32)

    # ---- multi-scale robust loss (constants pre-folded: multiplies + exp/log) ----
    m_scale = jnp.where(diff < a_thresh, maskf, 0.0) if use_a else maskf
    xr = diff * inv_c
    xr = xr * xr * inv_abs_a2 + 1.0
    rl = (jnp.exp(half_a * jnp.log(xr)) - 1.0) * rl_scale      # x ** (a/2) - 1, scaled
    s_num = jnp.sum(rl * m_scale)
    s_den = jnp.sum(m_scale)

    zero = jnp.float32(0.0)
    sl_num = sl_den = c_num = c_den = zero

    if has_slant:
        dx, dy = slant_ref[:, 0], slant_ref[:, 1]        # channel indexed in-kernel
        dxg, dyg = dxygt_ref[:, 0], dxygt_ref[:, 1]
        # TODO(synk): faithful to the PyTorch (B,1,H,W)-(B,H,W) broadcast, which mixes
        # batch samples (only differs from elementwise |dxg-dx|+|dyg-dy| when B > 1);
        # confirm intent upstream before simplifying away the BxB term.
        l1 = (jnp.sum(jnp.abs(dxg[:, None] - dx[None, :]), axis=1)
              + jnp.sum(jnp.abs(dyg[:, None] - dy[None, :]), axis=1))
        m_sl = jnp.where(diff < b_thresh, maskf, 0.0)
        sl_num = jnp.sum(l1 * m_sl)
        sl_den = jnp.sum(m_sl)

    if has_conf:
        conf = conf_ref[...]
        closer = diff < c1
        further = diff > c2
        m_c = jnp.where(jnp.logical_or(closer, further), maskf, 0.0)
        lc = (jnp.maximum(1.0 - conf, 0.0) * closer.astype(jnp.float32)
              + jnp.maximum(conf, 0.0) * further.astype(jnp.float32))
        c_num = jnp.sum(lc * m_c)
        c_den = jnp.sum(m_c)

    out_ref[...] = _pack_partials((s_num, s_den, sl_num, sl_den, c_num, c_den))


def _init_loss_kernel(vol_ref, tgt_ref, out_ref, *, d_bins, max_disp_s, beta, k):
    """Cost-volume init-loss partial sums over one lane-dense pixel tile.

    vol_ref: (B, D, TILE_P) f32   tgt_ref: (B, TILE_P) f32 (pooled/rescaled GT)
    Output: (8,128) block; rows 0,1 @ lane 0 hold (gt+nm numerator, mask pixel count).
    Single pass over D: gather-interp via tent weights + k running minima for
    negative mining (no cost-volume copy, no repeated min-extraction rounds).
    """
    tp = tgt_ref[...]                                      # (B, TILE_P)
    mask = jnp.logical_and(tp < max_disp_s, tp > 0.001)
    maskf = mask.astype(jnp.float32)
    not_mask = jnp.logical_not(mask)

    df = jnp.floor(tp)
    frac = tp - df
    one_m_frac = 1.0 - frac
    dlo = jnp.clip(df, 0.0, float(d_bins - 1))             # preserves clamp-at-D-1 edge case
    dhi = jnp.clip(df + 1.0, 0.0, float(d_bins - 1))
    inf = jnp.float32(jnp.inf)

    phi = jnp.zeros_like(tp)
    mins = [jnp.full_like(tp, inf) for _ in range(k)]      # running k smallest (sorted)

    for d in range(d_bins):                                # static unrolled loop over D
        v = vol_ref[:, d, :]                               # (B, TILE_P)
        dd = jnp.float32(d)
        # gather-interp tent weight for this bin (single fused pass)
        wgt = (jnp.where(dlo == dd, one_m_frac, 0.0)
               + jnp.where(dhi == dd, frac, 0.0))
        phi = phi + v * wgt
        # negative mining: exclude [gt-1.5, gt+1.5] and invalid pixels
        excl = jnp.logical_or(
            jnp.logical_and(tp - 1.5 <= dd, dd <= tp + 1.5), not_mask)
        vm = jnp.where(excl, inf, v)
        for j in range(k):                                 # bubble-insert into sorted minima
            lo = jnp.minimum(mins[j], vm)
            vm = jnp.maximum(mins[j], vm)
            mins[j] = lo

    num = jnp.sum(phi * maskf)
    for j in range(k):
        num = num + jnp.sum(jnp.maximum(beta - mins[j], 0.0) * maskf)
    den = jnp.sum(maskf)
    out_ref[...] = _pack_partials((num, den))


# ----------------------------------------------------------------------------
# HypLoss module (JAX wrapper orchestrating the Pallas kernels)
# ----------------------------------------------------------------------------

class HypLossPallas:
    def __init__(self, cfg, max_disp, weight=None):
        self.slant = True
        self.max_disp = float(max_disp)
        self.loss_weight = weight     # accepted but unused in forward (matches PyTorch)
        p = cfg.get('parameters')
        self.A = float(p['A'])
        self.B = float(p['B'])
        self.C1 = float(p['C1'])
        self.C2 = float(p['C2'])
        self.robust_a = float(p['robust_a'])
        self.robust_c = float(p['robust_c'])
        self.beta = float(p['beta'])
        self.k = int(p['init_k'])
        self.last_prop = 3
        self.highest_only = cfg.get('highest_only', False)
        if self.highest_only:
            self.loss_weight = [1]
        self.pseudo_gt = cfg.get('pseudo_gt', False)
        # TODO(synk): pseudo_gt only builds a mask the original forward never folds
        # into the returned losses, so it is not implemented here.

    # ------------- fused per-level scale / slant / confidence losses -------------

    def _level_losses(self, pred, target, slant, dxygt, conf, use_a):
        Bsz, H, W = pred.shape
        has_slant = slant is not None
        has_conf = conf is not None
        limit, budget = _vmem_limit_and_budget()

        # bytes per row of H across all double-buffered f32 input tiles
        rows_of_bw = 2 + (4 if has_slant else 0) + (1 if has_conf else 0)
        per_row = 2 * 4 * Bsz * W * rows_of_bw
        max_rows = max(8, budget // per_row)
        tile_h = min(_round_up(H, 8), max(8, (max_rows // 8) * 8), 512)
        h_pad = _round_up(H, tile_h)
        n_tiles = h_pad // tile_h

        def pad_h(x, axis):
            if h_pad == H:
                return x
            pads = [(0, 0)] * x.ndim
            pads[axis] = (0, h_pad - H)
            return jnp.pad(x, pads)      # pad target with 0 -> masked out in kernel

        args = [pad_h(pred, 1), pad_h(target, 1)]
        in_specs = [pl.BlockSpec((Bsz, tile_h, W), lambda i: (0, i, 0)),
                    pl.BlockSpec((Bsz, tile_h, W), lambda i: (0, i, 0))]
        if has_slant:
            args += [pad_h(slant, 2), pad_h(dxygt, 2)]
            in_specs += [pl.BlockSpec((Bsz, 2, tile_h, W), lambda i: (0, 0, i, 0))] * 2
        if has_conf:
            args.append(pad_h(conf, 1))
            in_specs.append(pl.BlockSpec((Bsz, tile_h, W), lambda i: (0, i, 0)))

        abs_a2 = abs(self.robust_a - 2.0)
        kernel = functools.partial(
            _fused_level_kernel,
            max_disp=self.max_disp,
            a_thresh=self.A, use_a=bool(use_a),
            b_thresh=self.B, c1=self.C1, c2=self.C2,
            inv_c=1.0 / self.robust_c, inv_abs_a2=1.0 / abs_a2,
            half_a=self.robust_a / 2.0, rl_scale=abs_a2 / self.robust_a,
            has_slant=has_slant, has_conf=has_conf)

        out = pl.pallas_call(
            kernel,
            out_shape=jax.ShapeDtypeStruct((n_tiles, 8, 128), jnp.float32),
            grid=(n_tiles,),
            in_specs=in_specs,
            out_specs=pl.BlockSpec((None, 8, 128), lambda i: (i, 0, 0)),
            compiler_params=pltpu.CompilerParams(
                dimension_semantics=("parallel",),
                vmem_limit_bytes=limit),
        )(*args)

        sums = jnp.sum(out, axis=(0, 2))     # (8,) — only lane 0 is non-zero
        scale = sums[0] / (sums[1] + 1e-6)
        slant_l = sums[2] / (sums[3] + 1e-6) if has_slant else None
        conf_l = sums[4] / (sums[5] + 1e-6) if has_conf else None
        return scale, slant_l, conf_l

    # ------------- cost-volume init loss -------------

    def init_loss(self, volume, target, tile_size=4):
        Bsz, D, h, w = volume.shape
        scale = target.shape[-1] // w
        scale_disp = max(1, scale // tile_size)
        tgt = target / scale_disp
        max_disp_s = self.max_disp / scale_disp
        Bt, H, W = tgt.shape
        # F.max_pool2d(kernel_size=scale, stride=scale) -> tiny plain-JAX glue
        tgt_pooled = tgt.reshape(Bt, H // scale, scale, W // scale, scale).max(axis=(2, 4))
        assert D == int(np.ceil(max_disp_s)), \
            "cost-volume depth must match max_disp at this scale (torch masked_fill requirement)"

        # Lane-dense layout: flatten (h, w) -> P and pad P to a multiple of 128.
        P = h * w
        vol2 = volume.reshape(Bsz, D, P)
        tgt2 = tgt_pooled.reshape(Bsz, P)

        limit, budget = _vmem_limit_and_budget()
        per_col = 2 * 4 * (Bsz * D + Bsz)            # double-buffered f32 bytes per column
        max_cols = max(128, budget // per_col)
        tile_p = min(_round_up(P, 128), max(128, (max_cols // 128) * 128), 16384)
        p_pad = _round_up(P, tile_p)
        if p_pad != P:
            vol2 = jnp.pad(vol2, ((0, 0), (0, 0), (0, p_pad - P)))
            tgt2 = jnp.pad(tgt2, ((0, 0), (0, p_pad - P)))
        n_tiles = p_pad // tile_p

        kernel = functools.partial(_init_loss_kernel, d_bins=D,
                                   max_disp_s=float(max_disp_s),
                                   beta=self.beta, k=self.k)
        out = pl.pallas_call(
            kernel,
            out_shape=jax.ShapeDtypeStruct((n_tiles, 8, 128), jnp.float32),
            grid=(n_tiles,),
            in_specs=[pl.BlockSpec((Bsz, D, tile_p), lambda i: (0, 0, i)),
                      pl.BlockSpec((Bsz, tile_p), lambda i: (0, i))],
            out_specs=pl.BlockSpec((None, 8, 128), lambda i: (i, 0, 0)),
            compiler_params=pltpu.CompilerParams(
                dimension_semantics=("parallel",),
                vmem_limit_bytes=limit),
        )(vol2, tgt2)

        sums = jnp.sum(out, axis=(0, 2))
        return sums[0] / (sums[1] + 1e-6)

    # ------------- forward -------------

    def forward(self, preds_dict, target, dxygt=None, pseudo_disp=None, **kwargs):
        preds = preds_dict['preds_pyramid']
        preds_coarse = preds_dict['preds_pyramid_coarse']
        slant_set = preds_dict['slant_pyramid']
        slant_coarse = preds_dict['slant_pyramid_coarse']
        conf_set = preds_dict['confidence_pyramid']
        conf_coarse = preds_dict['confidence_pyramid_coarse']
        volume_set = preds_dict['volume_pyramid']

        assert not (self.pseudo_gt and pseudo_disp is None), \
            "Pseudo ground truth could not be None when adopted"
        assert not (self.slant and dxygt is None), "Slant truth could not be None!!"

        if not isinstance(preds, list):
            preds = [preds]
        if self.highest_only:
            preds = [preds[-1]]

        scale_loss = init_loss = slant_loss = conf_loss = 0.0
        scale_pyr, init_pyr, slant_pyr, conf_pyr = [], [], [], []
        scale_pyr_c, slant_pyr_c, conf_pyr_c = [], [], []

        n = len(preds)
        # Fine pyramid: one fused kernel per level reads pred/target once and emits
        # scale + slant[i] + conf[i-1] partial sums (conf pairs with preds[i+1]).
        for i in range(n):
            use_a = i < n - self.last_prop
            sl = slant_set[i] if (slant_set is not None and i < len(slant_set)) else None
            cf = (conf_set[i - 1]
                  if (conf_set is not None and 0 <= i - 1 < len(conf_set)) else None)
            s, slv, cfv = self._level_losses(preds[i], target, sl, dxygt, cf, use_a)
            scale_pyr.append(s)
            scale_loss = scale_loss + s
            if slv is not None:
                slant_pyr.append(slv)
                slant_loss = slant_loss + slv
            if cfv is not None:
                conf_pyr.append(cfv)
                conf_loss = conf_loss + cfv

        # Coarse pyramid: scale + slant_coarse[i] + conf_coarse[i] fused per level.
        for i in range(len(preds_coarse)):
            sl = (slant_coarse[i]
                  if (slant_coarse is not None and i < len(slant_coarse)) else None)
            cf = (conf_coarse[i]
                  if (conf_coarse is not None and i < len(conf_coarse)) else None)
            s, slv, cfv = self._level_losses(preds_coarse[i], target, sl, dxygt, cf,
                                             use_a=False)
            scale_pyr_c.append(s)
            scale_loss = scale_loss + s
            if slv is not None:
                slant_pyr_c.append(slv)
                slant_loss = slant_loss + slv
            if cfv is not None:
                conf_pyr_c.append(cfv)
                conf_loss = conf_loss + cfv

        if volume_set is not None:
            for v in volume_set:
                cur = self.init_loss(v, target, tile_size=4)
                init_pyr.append(cur)
                init_loss = init_loss + cur

        total_loss = scale_loss + init_loss + slant_loss + conf_loss
        return {'total_loss': total_loss,
                'multi_preds_loss': scale_loss,
                'multi_preds_pyramid': scale_pyr,
                'multi_preds_pyramid_coarse': scale_pyr_c,
                'init_loss': init_loss,
                'init_pyramid': init_pyr,
                'slant_loss': slant_loss,
                'slant_pyramid': slant_pyr,
                'slant_pyramid_coarse': slant_pyr_c,
                'confidence_loss': conf_loss,
                'confidence_pyramid': conf_pyr,
                'confidence_pyramid_coarse': conf_pyr_c}


# ----------------------------------------------------------------------------
# Pure-JAX reference (mirrors the PyTorch math) for a correctness check
# ----------------------------------------------------------------------------

def _ref_forward(mod, preds_dict, target, dxygt):
    md, A, Bp, C1, C2 = mod.max_disp, mod.A, mod.B, mod.C1, mod.C2
    ra, rc, beta, k = mod.robust_a, mod.robust_c, mod.beta, mod.k
    mask = (target < md) & (target > 0.001)

    def mm(loss, m):
        m = m.astype(jnp.float32)
        return (loss * m).sum() / (m.sum() + 1e-6)

    def scale_l(pred, use_A):
        diff = jnp.abs(pred - target)
        closer = (diff < A) if use_A else mask
        return mm(_robust_loss(diff, ra, rc), mask & closer)

    def slant_l(slant, pred):
        dx, dy = slant[:, 0], slant[:, 1]
        dxg, dyg = dxygt[:, :1], dxygt[:, 1:]
        dd = jnp.abs(pred - target)
        sd = jnp.concatenate([dxg - dx, dyg - dy], axis=1)   # (B,2B,H,W) like torch
        return mm(jnp.sum(jnp.abs(sd), axis=1), mask & (dd < Bp))

    def conf_l(conf, pred):
        diff = jnp.abs(pred - target)
        closer, further = diff < C1, diff > C2
        loss = jax.nn.relu(1.0 - conf) * closer + jax.nn.relu(conf) * further
        return mm(loss, mask & (closer | further))

    def init_l(volume):
        _, D, h, w = volume.shape
        scale = target.shape[-1] // w
        sdisp = max(1, scale // 4)
        tgt = target / sdisp
        mds = md / sdisp
        Bt, H, W = tgt.shape
        tp = tgt.reshape(Bt, H // scale, scale, W // scale, scale).max(axis=(2, 4))
        msk = (tp < mds) & (tp > 0.001)
        mf = msk.astype(jnp.float32)
        pix = mf.sum() + 1e-6
        df = jnp.floor(tp).astype(jnp.int32)
        frac = tp - df

        def rho(d):
            d = jnp.clip(d, 0, D - 1)
            return jnp.take_along_axis(volume, d[:, None], axis=1)[:, 0]

        phi = frac * rho(df + 1) + (1.0 - frac) * rho(df)
        gt = (phi * mf).sum() / pix
        dr = jnp.arange(D, dtype=jnp.float32)[None, :, None, None]
        tp4 = tp[:, None]
        rmask = ((tp4 - 1.5 <= dr) & (dr <= tp4 + 1.5)) | (~msk[:, None])
        cv = jnp.where(rmask, jnp.inf, volume)
        smallest = -jax.lax.top_k(jnp.moveaxis(-cv, 1, -1), k)[0]    # (B,h,w,k)
        nm = (jnp.maximum(beta - smallest, 0.0) * mf[..., None]).sum() / pix
        return gt + nm

    preds = preds_dict['preds_pyramid']
    preds_c = preds_dict['preds_pyramid_coarse']
    total = 0.0
    for i in range(len(preds)):
        total = total + scale_l(preds[i], use_A=(i < len(preds) - mod.last_prop))
    for p in preds_c:
        total = total + scale_l(p, use_A=False)
    for v in preds_dict['volume_pyramid']:
        total = total + init_l(v)
    for i, s in enumerate(preds_dict['slant_pyramid']):
        total = total + slant_l(s, preds[i])
    for i, s in enumerate(preds_dict['slant_pyramid_coarse']):
        total = total + slant_l(s, preds_c[i])
    for i, c in enumerate(preds_dict['confidence_pyramid']):
        total = total + conf_l(c, preds[i + 1])
    for i, c in enumerate(preds_dict['confidence_pyramid_coarse']):
        total = total + conf_l(c, preds_c[i])
    return total


# ----------------------------------------------------------------------------
# Main
# ----------------------------------------------------------------------------

if __name__ == "__main__":
    B, H, W = 2, 16, 16
    max_disp = 16
    n_levels = 4

    keys = iter(jax.random.split(jax.random.PRNGKey(0), 64))
    nxt = lambda: next(keys)

    target = jax.random.uniform(nxt(), (B, H, W), jnp.float32, 0.5, max_disp - 0.5)
    dxygt = 0.2 * jax.random.normal(nxt(), (B, 2, H, W), jnp.float32)

    preds = [target + (0.5 + 0.5 * i) * jax.random.normal(nxt(), (B, H, W), jnp.float32)
             for i in range(n_levels)]
    preds_coarse = [target + 1.5 * jax.random.normal(nxt(), (B, H, W), jnp.float32)
                    for _ in range(2)]
    slant_set = [dxygt + 0.05 * jax.random.normal(nxt(), (B, 2, H, W), jnp.float32)
                 for _ in range(n_levels)]
    slant_coarse = [dxygt + 0.1 * jax.random.normal(nxt(), (B, 2, H, W), jnp.float32)
                    for _ in range(2)]
    conf_set = [jax.random.uniform(nxt(), (B, H, W), jnp.float32)
                for _ in range(n_levels - 1)]
    conf_coarse = [jax.random.uniform(nxt(), (B, H, W), jnp.float32) for _ in range(2)]
    # cost volumes: D = max_disp / scale_disp = 16 at both pyramid levels
    volume_set = [jax.random.uniform(nxt(), (B, 16, 4, 4), jnp.float32, 0.0, 2.0),
                  jax.random.uniform(nxt(), (B, 16, 8, 8), jnp.float32, 0.0, 2.0)]

    preds_dict = {
        'preds_pyramid': preds,
        'preds_pyramid_coarse': preds_coarse,
        'slant_pyramid': slant_set,
        'slant_pyramid_coarse': slant_coarse,
        'confidence_pyramid': conf_set,
        'confidence_pyramid_coarse': conf_coarse,
        'volume_pyramid': volume_set,
    }

    cfg = {'parameters': {'A': 3.0, 'B': 1.0, 'C1': 1.0, 'C2': 4.0,
                          'robust_a': 0.8, 'robust_c': 0.5,
                          'beta': 1.0, 'init_k': 3},
           'highest_only': False,
           'pseudo_gt': False}

    loss_mod = HypLossPallas(cfg, max_disp=max_disp, weight=None)
    out = loss_mod.forward(preds_dict, target, dxygt=dxygt)
    total = jax.block_until_ready(out['total_loss'])

    ref_total = jax.block_until_ready(_ref_forward(loss_mod, preds_dict, target, dxygt))
    np.testing.assert_allclose(np.asarray(total), np.asarray(ref_total),
                               rtol=5e-3, atol=5e-3)

    print("KERNEL_OK")
</pallas_src>

<mosaic_0001>
module attributes {stable_mosaic.version = 11 : i64} {
  func.func @_fused_level_kernel(%arg0: i32, %arg1: memref<2x16x16xf32, #tpu.memory_space<vmem>>, %arg2: memref<2x16x16xf32, #tpu.memory_space<vmem>>, %arg3: memref<2x2x16x16xf32, #tpu.memory_space<vmem>>, %arg4: memref<2x2x16x16xf32, #tpu.memory_space<vmem>>, %arg5: memref<1x8x128xf32, #tpu.memory_space<vmem>>) attributes {dimension_semantics = [#tpu.dimension_semantics<parallel>], iteration_bounds = array<i64: 1>, scalar_prefetch = 0 : i64, scratch_operands = 0 : i64, tpu.core_type = #tpu.core_type<tc>, window_params = [{transform_indices = @transform_0, window_bounds = array<i64: 2, 16, 16>}, {transform_indices = @transform_1, window_bounds = array<i64: 2, 16, 16>}, {transform_indices = @transform_2, window_bounds = array<i64: 2, 2, 16, 16>}, {transform_indices = @transform_3, window_bounds = array<i64: 2, 2, 16, 16>}, {transform_indices = @transform_4, window_bounds = array<i64: 1, 8, 128>}]} {
    %c0 = arith.constant 0 : index
    %c0_0 = arith.constant 0 : index
    %c0_1 = arith.constant 0 : index
    %0 = vector.load %arg1[%c0, %c0_0, %c0_1] : memref<2x16x16xf32, #tpu.memory_space<vmem>>, vector<2x16x16xf32>
    %c0_2 = arith.constant 0 : index
    %c0_3 = arith.constant 0 : index
    %c0_4 = arith.constant 0 : index
    %1 = vector.load %arg2[%c0_2, %c0_3, %c0_4] : memref<2x16x16xf32, #tpu.memory_space<vmem>>, vector<2x16x16xf32>
    %2 = arith.subf %0, %1 : vector<2x16x16xf32>
    %3 = math.absf %2 : vector<2x16x16xf32>
    %cst = arith.constant 1.600000e+01 : f32
    %4 = vector.broadcast %cst : f32 to vector<2x16x16xf32>
    %5 = arith.cmpf olt, %1, %4 : vector<2x16x16xf32>
    %cst_5 = arith.constant 1.000000e-03 : f32
    %6 = vector.broadcast %cst_5 : f32 to vector<2x16x16xf32>
    %7 = arith.cmpf ogt, %1, %6 : vector<2x16x16xf32>
    %8 = arith.andi %5, %7 : vector<2x16x16xi1>
    %9 = arith.extui %8 : vector<2x16x16xi1> to vector<2x16x16xi32>
    %10 = arith.sitofp %9 : vector<2x16x16xi32> to vector<2x16x16xf32>
    %cst_6 = arith.constant 3.000000e+00 : f32
    %11 = vector.broadcast %cst_6 : f32 to vector<2x16x16xf32>
    %12 = arith.cmpf olt, %3, %11 : vector<2x16x16xf32>
    %cst_7 = arith.constant 0.000000e+00 : f32
    %13 = vector.broadcast %cst_7 : f32 to vector<2x16x16xf32>
    %14 = arith.select %12, %10, %13 : vector<2x16x16xi1>, vector<2x16x16xf32>
    %cst_8 = arith.constant 2.000000e+00 : f32
    %15 = vector.broadcast %cst_8 : f32 to vector<2x16x16xf32>
    %16 = arith.mulf %3, %15 : vector<2x16x16xf32>
    %17 = arith.mulf %16, %16 : vector<2x16x16xf32>
    %cst_9 = arith.constant 0.833333313 : f32
    %18 = vector.broadcast %cst_9 : f32 to vector<2x16x16xf32>
    %19 = arith.mulf %17, %18 : vector<2x16x16xf32>
    %cst_10 = arith.constant 1.000000e+00 : f32
    %20 = vector.broadcast %cst_10 : f32 to vector<2x16x16xf32>
    %21 = arith.addf %19, %20 : vector<2x16x16xf32>
    %22 = math.log %21 : vector<2x16x16xf32>
    %cst_11 = arith.constant 4.000000e-01 : f32
    %23 = vector.broadcast %cst_11 : f32 to vector<2x16x16xf32>
    %24 = arith.mulf %23, %22 : vector<2x16x16xf32>
    %25 = math.exp %24 : vector<2x16x16xf32>
    %cst_12 = arith.constant 1.000000e+00 : f32
    %26 = vector.broadcast %cst_12 : f32 to vector<2x16x16xf32>
    %27 = arith.subf %25, %26 : vector<2x16x16xf32>
    %cst_13 = arith.constant 1.500000e+00 : f32
    %28 = vector.broadcast %cst_13 : f32 to vector<2x16x16xf32>
    %29 = arith.mulf %27, %28 : vector<2x16x16xf32>
    %30 = arith.mulf %29, %14 : vector<2x16x16xf32>
    %31 = vector.shape_cast %30 : vector<2x16x16xf32> to vector<1x2x16x16xf32>
    %cst_14 = arith.constant dense<0.000000e+00> : vector<1xf32>
    %32 = vector.multi_reduction <add>, %31, %cst_14 [1, 2, 3] : vector<1x2x16x16xf32> to vector<1xf32>
    %33 = vector.shape_cast %32 : vector<1xf32> to vector<1x1x1x1xf32>
    %34 = vector.extract %33[0, 0, 0, 0] : f32 from vector<1x1x1x1xf32>
    %35 = vector.shape_cast %14 : vector<2x16x16xf32> to vector<1x2x16x16xf32>
    %cst_15 = arith.constant dense<0.000000e+00> : vector<1xf32>
    %36 = vector.multi_reduction <add>, %35, %cst_15 [1, 2, 3] : vector<1x2x16x16xf32> to vector<1xf32>
    %37 = vector.shape_cast %36 : vector<1xf32> to vector<1x1x1x1xf32>
    %38 = vector.extract %37[0, 0, 0, 0] : f32 from vector<1x1x1x1xf32>
    %c0_16 = arith.constant 0 : index
    %c0_17 = arith.constant 0 : index
    %c0_18 = arith.constant 0 : index
    %c0_19 = arith.constant 0 : index
    %39 = vector.load %arg3[%c0_16, %c0_17, %c0_18, %c0_19] : memref<2x2x16x16xf32, #tpu.memory_space<vmem>>, vector<2x1x16x16xf32>
    %40 = vector.shape_cast %39 : vector<2x1x16x16xf32> to vector<2x16x16xf32>
    %c0_20 = arith.constant 0 : index
    %c1 = arith.constant 1 : index
    %c0_21 = arith.constant 0 : index
    %c0_22 = arith.constant 0 : index
    %41 = vector.load %arg3[%c0_20, %c1, %c0_21, %c0_22] : memref<2x2x16x16xf32, #tpu.memory_space<vmem>>, vector<2x1x16x16xf32>
    %42 = vector.shape_cast %41 : vector<2x1x16x16xf32> to vector<2x16x16xf32>
    %c0_23 = arith.constant 0 : index
    %c0_24 = arith.constant 0 : index
    %c0_25 = arith.constant 0 : index
    %c0_26 = arith.constant 0 : index
    %43 = vector.load %arg4[%c0_23, %c0_24, %c0_25, %c0_26] : memref<2x2x16x16xf32, #tpu.memory_space<vmem>>, vector<2x1x16x16xf32>
    %44 = vector.shape_cast %43 : vector<2x1x16x16xf32> to vector<2x16x16xf32>
    %c0_27 = arith.constant 0 : index
    %c1_28 = arith.constant 1 : index
    %c0_29 = arith.constant 0 : index
    %c0_30 = arith.constant 0 : index
    %45 = vector.load %arg4[%c0_27, %c1_28, %c0_29, %c0_30] : memref<2x2x16x16xf32, #tpu.memory_space<vmem>>, vector<2x1x16x16xf32>
    %46 = vector.shape_cast %45 : vector<2x1x16x16xf32> to vector<2x16x16xf32>
    %47 = vector.shape_cast %44 : vector<2x16x16xf32> to vector<2x1x16x16xf32>
    %48 = vector.shape_cast %40 : vector<2x16x16xf32> to vector<1x2x16x16xf32>
    %49 = vector.broadcast %47 : vector<2x1x16x16xf32> to vector<2x2x16x16xf32>
    %50 = vector.broadcast %48 : vector<1x2x16x16xf32> to vector<2x2x16x16xf32>
    %51 = arith.subf %49, %50 : vector<2x2x16x16xf32>
    %52 = math.absf %51 : vector<2x2x16x16xf32>
    %cst_31 = arith.constant dense<0.000000e+00> : vector<2x16x16xf32>
    %53 = vector.multi_reduction <add>, %52, %cst_31 [1] : vector<2x2x16x16xf32> to vector<2x16x16xf32>
    %54 = vector.shape_cast %46 : vector<2x16x16xf32> to vector<2x1x16x16xf32>
    %55 = vector.shape_cast %42 : vector<2x16x16xf32> to vector<1x2x16x16xf32>
    %56 = vector.broadcast %54 : vector<2x1x16x16xf32> to vector<2x2x16x16xf32>
    %57 = vector.broadcast %55 : vector<1x2x16x16xf32> to vector<2x2x16x16xf32>
    %58 = arith.subf %56, %57 : vector<2x2x16x16xf32>
    %59 = math.absf %58 : vector<2x2x16x16xf32>
    %cst_32 = arith.constant dense<0.000000e+00> : vector<2x16x16xf32>
    %60 = vector.multi_reduction <add>, %59, %cst_32 [1] : vector<2x2x16x16xf32> to vector<2x16x16xf32>
    %61 = arith.addf %53, %60 : vector<2x16x16xf32>
    %cst_33 = arith.constant 1.000000e+00 : f32
    %62 = vector.broadcast %cst_33 : f32 to vector<2x16x16xf32>
    %63 = arith.cmpf olt, %3, %62 : vector<2x16x16xf32>
    %cst_34 = arith.constant 0.000000e+00 : f32
    %64 = vector.broadcast %cst_34 : f32 to vector<2x16x16xf32>
    %65 = arith.select %63, %10, %64 : vector<2x16x16xi1>, vector<2x16x16xf32>
    %66 = arith.mulf %61, %65 : vector<2x16x16xf32>
    %67 = vector.shape_cast %66 : vector<2x16x16xf32> to vector<1x2x16x16xf32>
    %cst_35 = arith.constant dense<0.000000e+00> : vector<1xf32>
    %68 = vector.multi_reduction <add>, %67, %cst_35 [1, 2, 3] : vector<1x2x16x16xf32> to vector<1xf32>
    %69 = vector.shape_cast %68 : vector<1xf32> to vector<1x1x1x1xf32>
    %70 = vector.extract %69[0, 0, 0, 0] : f32 from vector<1x1x1x1xf32>
    %71 = vector.shape_cast %65 : vector<2x16x16xf32> to vector<1x2x16x16xf32>
    %cst_36 = arith.constant dense<0.000000e+00> : vector<1xf32>
    %72 = vector.multi_reduction <add>, %71, %cst_36 [1, 2, 3] : vector<1x2x16x16xf32> to vector<1xf32>
    %73 = vector.shape_cast %72 : vector<1xf32> to vector<1x1x1x1xf32>
    %74 = vector.extract %73[0, 0, 0, 0] : f32 from vector<1x1x1x1xf32>
    %75 = tpu.iota {dimensions = array<i32: 0>} : vector<8x128xi32>
    %76 = tpu.iota {dimensions = array<i32: 1>} : vector<8x128xi32>
    %c0_i32 = arith.constant 0 : i32
    %77 = vector.broadcast %c0_i32 : i32 to vector<8x128xi32>
    %78 = arith.cmpi eq, %76, %77 : vector<8x128xi32>
    %cst_37 = arith.constant 0.000000e+00 : f32
    %79 = vector.broadcast %cst_37 : f32 to vector<8x128xf32>
    %c0_i32_38 = arith.constant 0 : i32
    %80 = vector.broadcast %c0_i32_38 : i32 to vector<8x128xi32>
    %81 = arith.cmpi eq, %75, %80 : vector<8x128xi32>
    %82 = arith.andi %81, %78 : vector<8x128xi1>
    %83 = vector.broadcast %34 : f32 to vector<8x128xf32>
    %84 = arith.select %82, %83, %79 : vector<8x128xi1>, vector<8x128xf32>
    %c1_i32 = arith.constant 1 : i32
    %85 = vector.broadcast %c1_i32 : i32 to vector<8x128xi32>
    %86 = arith.cmpi eq, %75, %85 : vector<8x128xi32>
    %87 = arith.andi %86, %78 : vector<8x128xi1>
    %88 = vector.broadcast %38 : f32 to vector<8x128xf32>
    %89 = arith.select %87, %88, %84 : vector<8x128xi1>, vector<8x128xf32>
    %c2_i32 = arith.constant 2 : i32
    %90 = vector.broadcast %c2_i32 : i32 to vector<8x128xi32>
    %91 = arith.cmpi eq, %75, %90 : vector<8x128xi32>
    %92 = arith.andi %91, %78 : vector<8x128xi1>
    %93 = vector.broadcast %70 : f32 to vector<8x128xf32>
    %94 = arith.select %92, %93, %89 : vector<8x128xi1>, vector<8x128xf32>
    %c3_i32 = arith.constant 3 : i32
    %95 = vector.broadcast %c3_i32 : i32 to vector<8x128xi32>
    %96 = arith.cmpi eq, %75, %95 : vector<8x128xi32>
    %97 = arith.andi %96, %78 : vector<8x128xi1>
    %98 = vector.broadcast %74 : f32 to vector<8x128xf32>
    %99 = arith.select %97, %98, %94 : vector<8x128xi1>, vector<8x128xf32>
    %c4_i32 = arith.constant 4 : i32
    %100 = vector.broadcast %c4_i32 : i32 to vector<8x128xi32>
    %101 = arith.cmpi eq, %75, %100 : vector<8x128xi32>
    %102 = arith.andi %101, %78 : vector<8x128xi1>
    %cst_39 = arith.constant 0.000000e+00 : f32
    %103 = vector.broadcast %cst_39 : f32 to vector<8x128xf32>
    %104 = arith.select %102, %103, %99 : vector<8x128xi1>, vector<8x128xf32>
    %c5_i32 = arith.constant 5 : i32
    %105 = vector.broadcast %c5_i32 : i32 to vector<8x128xi32>
    %106 = arith.cmpi eq, %75, %105 : vector<8x128xi32>
    %107 = arith.andi %106, %78 : vector<8x128xi1>
    %cst_40 = arith.constant 0.000000e+00 : f32
    %108 = vector.broadcast %cst_40 : f32 to vector<8x128xf32>
    %109 = arith.select %107, %108, %104 : vector<8x128xi1>, vector<8x128xf32>
    %c0_41 = arith.constant 0 : index
    %c0_42 = arith.constant 0 : index
    %c0_43 = arith.constant 0 : index
    %110 = vector.load %arg5[%c0_41, %c0_42, %c0_43] : memref<1x8x128xf32, #tpu.memory_space<vmem>>, vector<1x8x128xf32>
    %111 = vector.shape_cast %110 : vector<1x8x128xf32> to vector<8x128xf32>
    %112 = vector.shape_cast %109 : vector<8x128xf32> to vector<1x8x128xf32>
    tpu.vector_store %arg5[%c0_41, %c0_42, %c0_43], %112 {strides = array<i32>} : memref<1x8x128xf32, #tpu.memory_space<vmem>>, vector<1x8x128xf32>,
    return
  }
  func.func @transform_0(%arg0: i32) -> (i32, i32, i32) {
    %c0_i32 = arith.constant 0 : i32
    %c0_i32_0 = arith.constant 0 : i32
    %c0_i32_1 = arith.constant 0 : i32
    return %c0_i32, %arg0, %c0_i32_0 : i32, i32, i32
  }
  func.func @transform_1(%arg0: i32) -> (i32, i32, i32) {
    %c0_i32 = arith.constant 0 : i32
    %c0_i32_0 = arith.constant 0 : i32
    %c0_i32_1 = arith.constant 0 : i32
    return %c0_i32, %arg0, %c0_i32_0 : i32, i32, i32
  }
  func.func @transform_2(%arg0: i32) -> (i32, i32, i32, i32) {
    %c0_i32 = arith.constant 0 : i32
    %c0_i32_0 = arith.constant 0 : i32
    %c0_i32_1 = arith.constant 0 : i32
    %c0_i32_2 = arith.constant 0 : i32
    return %c0_i32, %c0_i32_0, %arg0, %c0_i32_1 : i32, i32, i32, i32
  }
  func.func @transform_3(%arg0: i32) -> (i32, i32, i32, i32) {
    %c0_i32 = arith.constant 0 : i32
    %c0_i32_0 = arith.constant 0 : i32
    %c0_i32_1 = arith.constant 0 : i32
    %c0_i32_2 = arith.constant 0 : i32
    return %c0_i32, %c0_i32_0, %arg0, %c0_i32_1 : i32, i32, i32, i32
  }
  func.func @transform_4(%arg0: i32) -> (i32, i32, i32) {
    %c0_i32 = arith.constant 0 : i32
    %c0_i32_0 = arith.constant 0 : i32
    %c0_i32_1 = arith.constant 0 : i32
    return %arg0, %c0_i32, %c0_i32_0 : i32, i32, i32
  }
}

</mosaic_0001>

<bundles_post_ra>
// kernel: tpu_custom_call.1
= control target key start
LH: loop header
LB: loop body
LE: loop exit
PB: predicated region body
PF: predicated region fallthrough
CT: control target
= control target key end

     0   :  { %9 = vsyncpa [#allocation3], 0  ;;  %s741_s0 = inlined_call_operand.hbm [shape: f32[2,16,16], index: 0, kind: input, shape index: {}]   ;;  %s742_s1 = inlined_call_operand.hbm [shape: f32[2,16,16], index: 1, kind: input, shape index: {}]   ;;  %s743_s2 = inlined_call_operand.hbm [shape: f32[2,2,16,16], index: 2, kind: input, shape index: {}]   ;;  %s744_s3 = inlined_call_operand.hbm [shape: f32[2,2,16,16], index: 3, kind: input, shape index: {}]   ;;  %s745_s4 = inlined_call_operand.hbm [shape: f32[1,8,128], index: 4, kind: output, shape index: {}]  }
   0x1   :  { %10 = vsyncpa [#allocation6], 0 }
   0x2   :  { %11 = vsyncpa [#allocation9], 0 }
   0x3   :  { %12 = vsyncpa [#allocation4], 0  ;;  %s523_s15 = smov [#allocation5]   ;;  %s524_s17 = smov [#allocation2]  }
   0x4   :  { %s30_s16 = sshll.u32 %s523_s15, 4  ;;  %s18_s18 = sshll.u32 %s524_s17, 4  ;;  %s31_s16 = int_to_ptr.vmem [resolvable:$true] %s30_s16  ;;  %s556_s18 = int_to_ptr.vmem [resolvable:$true] %s18_s18 }
   0x5   :  { %s405_s21 = scalar_lea.hbm %s742_s1, 512 }
   0x6   :  { %p406_p0 = scmp.ne.s32.totalorder %s742_s1, %s405_s21  ;;  %p409_p1 = scmp.lt.u32.totalorder %s405_s21, %s742_s1 }
   0x8   :  { %p411_p2 = pnand %p409_p1, %p406_p0 }
   0xa   :  { %414 = shalt.err (!%p411_p2)
}
   0xb   :  { %s415_s26 = scalar_lea.vmem %s31_s16, 512  ;;  %p420_p4 = scmp.lt.s32.totalorder %s31_s16, %s31_s16 }
   0xc   :  { %p416_p3 = scmp.ne.s32.totalorder %s31_s16, %s415_s26  ;;  %p421_p5 = scmp.lt.s32.totalorder %s415_s26, %s415_s26 }
   0xe   :  { %p422_p6 = por %p421_p5, %p420_p4 }
  0x10   :  { %p423_p7 = pnand %p422_p6, %p416_p3 }
  0x12   :  { %426 = shalt.err (!%p423_p7)
}
  0x13   :  { %s525_s27 = smov 128   ;;  %s526_s28 = smov 8  }
  0x14   :  { %36 = dma.hbm_to_vmem [thread:$0]  %s742_s1, 512, %s31_s16, [#allocation6], %s525_s27, %s525_s27, %s526_s28  }
  0x15   :  { %s427_s7 = scalar_lea.hbm %s741_s0, 512 }
  0x16   :  { %p428_p8 = scmp.ne.s32.totalorder %s741_s0, %s427_s7  ;;  %p431_p9 = scmp.lt.u32.totalorder %s427_s7, %s741_s0 }
  0x18   :  { %p433_p10 = pnand %p431_p9, %p428_p8 }
  0x1a   :  { %436 = shalt.err (!%p433_p10)
}
  0x1b   :  { %s437_s12 = scalar_lea.vmem %s556_s18, 512  ;;  %p442_p12 = scmp.lt.s32.totalorder %s556_s18, %s556_s18 }
  0x1c   :  { %p438_p11 = scmp.ne.s32.totalorder %s556_s18, %s437_s12  ;;  %p443_p13 = scmp.lt.s32.totalorder %s437_s12, %s437_s12 }
  0x1e   :  { %p444_p0 = por %p443_p13, %p442_p12 }
  0x20   :  { %p445_p1 = pnand %p444_p0, %p438_p11 }
  0x22   :  { %448 = shalt.err (!%p445_p1)
}
  0x23   :  { %24 = dma.hbm_to_vmem [thread:$0]  %s741_s0, 512, %s556_s18, [#allocation3], %s525_s27, %s525_s27, %s526_s28  }
  0x24   :  { %s527_s14 = smov [#allocation7]   ;;  %s528_s16 = smov [#allocation8]  }
  0x25   :  { %s42_s15 = sshll.u32 %s527_s14, 4  ;;  %s54_s17 = sshll.u32 %s528_s16, 4  ;;  %s43_s15 = int_to_ptr.vmem [resolvable:$true] %s42_s15  ;;  %s593_s17 = int_to_ptr.vmem [resolvable:$true] %s54_s17 }
  0x26   :  { %s449_s21 = scalar_lea.hbm %s743_s2, 1024 }
  0x27   :  { %p450_p2 = scmp.ne.s32.totalorder %s743_s2, %s449_s21  ;;  %p453_p3 = scmp.lt.u32.totalorder %s449_s21, %s743_s2 }
  0x29   :  { %p455_p4 = pnand %p453_p3, %p450_p2 }
  0x2b   :  { %458 = shalt.err (!%p455_p4)
}
  0x2c   :  { %s459_s0 = scalar_lea.vmem %s43_s15, 1024  ;;  %p464_p6 = scmp.lt.s32.totalorder %s43_s15, %s43_s15 }
  0x2d   :  { %p460_p5 = scmp.ne.s32.totalorder %s43_s15, %s459_s0  ;;  %p465_p7 = scmp.lt.s32.totalorder %s459_s0, %s459_s0 }
  0x2f   :  { %p466_p8 = por %p465_p7, %p464_p6 }
  0x31   :  { %p467_p9 = pnand %p466_p8, %p460_p5 }
  0x33   :  { %470 = shalt.err (!%p467_p9)
}
  0x34   :  { %48 = dma.hbm_to_vmem [thread:$0]  %s743_s2, 1024, %s43_s15, [#allocation6], %s525_s27, %s525_s27, %s526_s28  }
  0x35   :  { %s471_s5 = scalar_lea.hbm %s744_s3, 1024 }
  0x36   :  { %p472_p10 = scmp.ne.s32.totalorder %s744_s3, %s471_s5  ;;  %p475_p11 = scmp.lt.u32.totalorder %s471_s5, %s744_s3 }
  0x38   :  { %p477_p12 = pnand %p475_p11, %p472_p10 }
  0x3a   :  { %480 = shalt.err (!%p477_p12)
}
  0x3b   :  { %s481_s10 = scalar_lea.vmem %s593_s17, 1024  ;;  %p486_p0 = scmp.lt.s32.totalorder %s593_s17, %s593_s17 }
  0x3c   :  { %p482_p13 = scmp.ne.s32.totalorder %s593_s17, %s481_s10  ;;  %p487_p1 = scmp.lt.s32.totalorder %s481_s10, %s481_s10 }
  0x3e   :  { %p488_p2 = por %p487_p1, %p486_p0 }
  0x40   :  { %p489_p3 = pnand %p488_p2, %p482_p13 }
  0x42   :  { %492 = shalt.err (!%p489_p3)
}
  0x43   :  { %60 = dma.hbm_to_vmem [thread:$0]  %s744_s3, 1024, %s593_s17, [#allocation9], %s525_s27, %s525_s27, %s526_s28  }
  0x44   :  { %515 = dma.done.wait [#allocation3], 512  }
  0x45   :  { %516 = vsyncadd [#allocation3], 4294966784 }
  0x46   :  { %517 = dma.done.wait [#allocation6], 1536  }
  0x47   :  { %518 = vsyncadd [#allocation6], 4294965760 }
  0x48   :  { %519 = dma.done.wait [#allocation9], 1024  }
  0x49   :  { %520 = vsyncadd [#allocation9], 4294966272  ;;  %v73_v0 = vld [vmem:[#allocation2] sm:$0xff]  ;;  %v74_v1 = vld [vmem:[#allocation2 + $0x8] sm:$0xff]  ;;  %v529_v17 = vmov 0.0   ;;  %vm165_vm11 = vcmask 130048  }
  0x4a   :  { %v75_v2 = vld [vmem:[#allocation2 + $0x10] sm:$0xff]  ;;  %v76_v3 = vld [vmem:[#allocation2 + $0x18] sm:$0xff]  ;;  %v77_v4 = vld [vmem:[#allocation5] sm:$0xff]  ;;  %s530_s1 = smov [#allocation10]  }
  0x4b   :  { %v78_v5 = vld [vmem:[#allocation5 + $0x8] sm:$0xff]  ;;  %v79_v6 = vld [vmem:[#allocation5 + $0x10] sm:$0xff]  ;;  %v80_v7 = vld [vmem:[#allocation5 + $0x18] sm:$0xff]  ;;  %v81_v8 = vsub.f32 %v73_v0, %v77_v4  ;;  %vm89_vm0 = vcmp.lt.f32.partialorder %v77_v4, 16.0  ;;  %vm93_vm4 = vcmp.gt.f32.partialorder %v77_v4, 0.001 }
  0x4c   :  { %v82_v9 = vsub.f32 %v74_v1, %v78_v5  ;;  %vm90_vm1 = vcmp.lt.f32.partialorder %v78_v5, 16.0  ;;  %v83_v10 = vsub.f32 %v75_v2, %v79_v6  ;;  %v84_v11 = vsub.f32 %v76_v3, %v80_v7  ;;  %vm97_vm6 = vmand %vm89_vm0, %vm93_vm4  ;;  %v198_v16 = vld [vmem:[#allocation7] sm:$0xff]  ;;  %v199_v19 = vld [vmem:[#allocation7 + $0x8] sm:$0xff]  ;;  %s354_s13 = sshll.u32 %s530_s1, 4  ;;  %s355_s13 = int_to_ptr.vmem [resolvable:$true] %s354_s13 }
  0x4d   :  { %vm91_vm2 = vcmp.lt.f32.partialorder %v79_v6, 16.0  ;;  %vm92_vm3 = vcmp.lt.f32.partialorder %v80_v7, 16.0  ;;  %v630_v12 = vand.u32 2147483647, %v81_v8  ;;  %vm94_vm5 = vcmp.gt.f32.partialorder %v78_v5, 0.001  ;;  %p498_p5 = scmp.lt.s32.totalorder %s355_s13, %s355_s13 }
  0x4e   :  { %v632_v13 = vand.u32 2147483647, %v82_v9  ;;  %v634_v14 = vand.u32 2147483647, %v83_v10  ;;  %v636_v15 = vand.u32 2147483647, %v84_v11  ;;  %vm98_vm9 = vmand %vm90_vm1, %vm94_vm5 }
  0x4f   :  { %vm95_vm7 = vcmp.gt.f32.partialorder %v79_v6, 0.001  ;;  %vm96_vm8 = vcmp.gt.f32.partialorder %v80_v7, 0.001  ;;  %v639_v18 = vsel %vm97_vm6, 1.0, %v529_v17  ;;  %v200_v20 = vld [vmem:[#allocation7 + $0x20] sm:$0xff] }
  0x50   :  { %vm99_vm10 = vmand %vm91_vm2, %vm95_vm7  ;;  %v201_v21 = vld [vmem:[#allocation7 + $0x28] sm:$0xff]  ;;  %vm276_vm12 = vcmp.lt.f32.partialorder %v630_v12, 1.0  ;;  %v644_v22 = vsel %vm98_vm9, 1.0, %v529_v17  ;;  %v647_v23 = vmul.f32 2.0, %v632_v13  ;;  %v650_v24 = vmul.f32 2.0, %v634_v14  ;;  %v207_v28 = vld [vmem:[#allocation8] sm:$0xff] }
  0x51   :  { %vm100_vm13 = vmand %vm92_vm3, %vm96_vm8  ;;  %v653_v25 = vmul.f32 2.0, %v636_v15  ;;  %v655_v26 = vsel %vm99_vm10, 1.0, %v529_v17  ;;  %v208_v29 = vld [vmem:[#allocation8 + $0x8] sm:$0xff]  ;;  %v209_v30 = vld [vmem:[#allocation8 + $0x20] sm:$0xff]  ;;  %v660_v31 = vsel %vm276_vm12, %v639_v18, 0.0  ;;  %v216_v34 = vsub.f32 %v207_v28, %v198_v16  ;;  %s493_s14 = scalar_lea.vmem %s355_s13, 128 }
  0x52   :  { %v657_v27 = vsel %vm100_vm13, 1.0, %v529_v17  ;;  %v203_v32 = vld [vmem:[#allocation7 + $0x10] sm:$0xff]  ;;  %v210_v33 = vld [vmem:[#allocation8 + $0x28] sm:$0xff]  ;;  %v217_v35 = vsub.f32 %v208_v29, %v199_v19  ;;  %v218_v36 = vsub.f32 %v207_v28, %v200_v20  ;;  %v219_v37 = vsub.f32 %v208_v29, %v201_v21  ;;  %v204_v38 = vld [vmem:[#allocation7 + $0x18] sm:$0xff]  ;;  %p494_p4 = scmp.ne.s32.totalorder %s355_s13, %s493_s14  ;;  %p499_p6 = scmp.lt.s32.totalorder %s493_s14, %s493_s14 }
  0x53   :  { %v212_v39 = vld [vmem:[#allocation8 + $0x10] sm:$0xff]  ;;  %v213_v40 = vld [vmem:[#allocation8 + $0x18] sm:$0xff]  ;;  %v220_v41 = vsub.f32 %v209_v30, %v198_v16  ;;  %v221_v42 = vsub.f32 %v210_v33, %v199_v19  ;;  %v222_v43 = vsub.f32 %v209_v30, %v200_v20  ;;  %v223_v44 = vsub.f32 %v210_v33, %v201_v21 }
  0x54   :  { %v205_v45 = vld [vmem:[#allocation7 + $0x30] sm:$0xff]  ;;  %v206_v46 = vld [vmem:[#allocation7 + $0x38] sm:$0xff]  ;;  %v224_v47 = vand.u32 2147483647, %v216_v34  ;;  %v225_v48 = vand.u32 2147483647, %v217_v35  ;;  %v244_v61 = vsub.f32 %v212_v39, %v203_v32  ;;  %v245_v62 = vsub.f32 %v213_v40, %v204_v38  ;;  %p500_p7 = por %p499_p6, %p498_p5 }
  0x55   :  { %v226_v49 = vand.u32 2147483647, %v218_v36  ;;  %v227_v50 = vand.u32 2147483647, %v219_v37  ;;  %v228_v51 = vand.u32 2147483647, %v220_v41  ;;  %v246_v5 = vsub.f32 %v212_v39, %v205_v45 }
  0x56   :  { %v229_v52 = vand.u32 2147483647, %v221_v42  ;;  %vm277_vm14 = vcmp.lt.f32.partialorder %v632_v13, 1.0  ;;  %v230_v53 = vand.u32 2147483647, %v222_v43  ;;  %v232_v55 = vsel %vm165_vm11, %v224_v47, 0.0  ;;  %p501_p8 = pnand %p500_p7, %p494_p4 }
  0x57   :  { %v231_v54 = vand.u32 2147483647, %v223_v44  ;;  %v233_v56 = vsel %vm165_vm11, %v226_v49, 0.0  ;;  %vm278_vm15 = vcmp.lt.f32.partialorder %v634_v14, 1.0  ;;  %vm279_vm0 = vcmp.lt.f32.partialorder %v636_v15, 1.0  ;;  %v214_v57 = vld [vmem:[#allocation8 + $0x30] sm:$0xff] }
  0x58   :  { %v215_v58 = vld [vmem:[#allocation8 + $0x38] sm:$0xff]  ;;  %v235_v59 = vsel %vm165_vm11, %v225_v48, 0.0  ;;  %v236_v60 = vsel %vm165_vm11, %v227_v50, 0.0  ;;  %v234_v63 = vadd.f32 %v233_v56, %v232_v55  ;;  %v238_v1 = vsel %vm165_vm11, %v228_v51, 0.0 }
  0x59   :  { %v237_v0 = vadd.f32 %v236_v60, %v235_v59  ;;  %v239_v2 = vsel %vm165_vm11, %v230_v53, 0.0  ;;  %v241_v3 = vsel %vm165_vm11, %v229_v52, 0.0  ;;  %v242_v4 = vsel %vm165_vm11, %v231_v54, 0.0 }
  0x5a   :  { %v247_v6 = vsub.f32 %v213_v40, %v206_v46  ;;  %v248_v7 = vsub.f32 %v214_v57, %v203_v32  ;;  %v249_v8 = vsub.f32 %v215_v58, %v204_v38  ;;  %v250_v9 = vsub.f32 %v214_v57, %v205_v45 }
  0x5b   :  { %v251_v10 = vsub.f32 %v215_v58, %v206_v46  ;;  %v240_v11 = vadd.f32 %v239_v2, %v238_v1  ;;  %v252_v16 = vand.u32 2147483647, %v244_v61  ;;  %v253_v17 = vand.u32 2147483647, %v245_v62 }
  0x5c   :  { %v254_v19 = vand.u32 2147483647, %v246_v5  ;;  %v243_v20 = vadd.f32 %v242_v4, %v241_v3  ;;  %v255_v21 = vand.u32 2147483647, %v247_v6  ;;  %v256_v28 = vand.u32 2147483647, %v248_v7 }
  0x5d   :  { %v257_v29 = vand.u32 2147483647, %v249_v8  ;;  %v258_v30 = vand.u32 2147483647, %v250_v9  ;;  %v259_v33 = vand.u32 2147483647, %v251_v10  ;;  %v122_v57 = vmul.f32 %v647_v23, %v647_v23 }
  0x5e   :  { %v260_v34 = vsel %vm165_vm11, %v252_v16, 0.0  ;;  %v261_v35 = vsel %vm165_vm11, %v254_v19, 0.0  ;;  %v263_v32 = vsel %vm165_vm11, %v253_v17, 0.0  ;;  %v264_v37 = vsel %vm165_vm11, %v255_v21, 0.0 }
  0x5f   :  { %v262_v36 = vadd.f32 %v261_v35, %v260_v34  ;;  %v266_v38 = vsel %vm165_vm11, %v256_v28, 0.0  ;;  %v265_v39 = vadd.f32 %v264_v37, %v263_v32  ;;  %v267_v40 = vsel %vm165_vm11, %v258_v30, 0.0 }
  0x60   :  { %v269_v41 = vsel %vm165_vm11, %v257_v29, 0.0  ;;  %v270_v42 = vsel %vm165_vm11, %v259_v33, 0.0  ;;  %v268_v43 = vadd.f32 %v267_v40, %v266_v38  ;;  %v281_v46 = vsel %vm277_vm14, %v644_v22, 0.0 }
  0x61   :  { %v271_v44 = vadd.f32 %v270_v42, %v269_v41  ;;  %v272_v45 = vadd.f32 %v262_v36, %v234_v63  ;;  %v273_v47 = vadd.f32 %v265_v39, %v237_v0  ;;  %v282_v48 = vsel %vm278_vm15, %v655_v26, 0.0 }
  0x62   :  { %v283_v49 = vsel %vm279_vm0, %v657_v27, 0.0  ;;  %v304_v50 = vsel %vm165_vm11, %v660_v31, 0.0  ;;  %v274_v51 = vadd.f32 %v268_v43, %v240_v11  ;;  %v305_v54 = vsel %vm165_vm11, %v281_v46, 0.0 }
  0x63   :  { %v275_v52 = vadd.f32 %v271_v44, %v243_v20  ;;  %v284_v53 = vmul.f32 %v660_v31, %v272_v45  ;;  %v285_v55 = vmul.f32 %v281_v46, %v273_v47  ;;  %v117_v56 = vmul.f32 2.0, %v630_v12 }
  0x64   :  { %v286_v58 = vmul.f32 %v282_v48, %v274_v51  ;;  %v306_v61 = vadd.f32 %v305_v54, %v304_v50  ;;  %v307_v63 = vsel %vm165_vm11, %v282_v48, 0.0  ;;  %v123_v31 = vmul.f32 %v650_v24, %v650_v24 }
  0x65   :  { %v287_v59 = vmul.f32 %v283_v49, %v275_v52  ;;  %v288_v60 = vsel %vm165_vm11, %v284_v53, 0.0  ;;  %v289_v62 = vsel %vm165_vm11, %v285_v55, 0.0  ;;  %v124_v0 = vmul.f32 %v653_v25, %v653_v25 }
  0x66   :  { %v290_v1 = vadd.f32 %v289_v62, %v288_v60  ;;  %v291_v2 = vsel %vm165_vm11, %v286_v58, 0.0  ;;  %v308_v4 = vadd.f32 %v307_v63, %v306_v61  ;;  %v121_v5 = vmul.f32 %v117_v56, %v117_v56 }
  0x67   :  { %v293_v23 = vsel %vm165_vm11, %v287_v59, 0.0  ;;  %v126_v6 = vmul.f32 0.8333333, %v122_v57  ;;  %v309_v7 = vsel %vm165_vm11, %v283_v49, 0.0  ;;  %v127_v8 = vmul.f32 0.8333333, %v123_v31 }
  0x68   :  { %v292_v3 = vadd.f32 %v291_v2, %v290_v1  ;;  %v128_v9 = vmul.f32 0.8333333, %v124_v0  ;;  %v125_v11 = vmul.f32 0.8333333, %v121_v5  ;;  %v310_v25 = vadd.f32 %v309_v7, %v308_v4 }
  0x69   :  { %v130_v16 = vadd.f32 1.0, %v126_v6  ;;  %v131_v24 = vadd.f32 1.0, %v127_v8  ;;  %vm110_vm1 = vcmp.lt.f32.partialorder %v632_v13, 3.0  ;;  %vm111_vm2 = vcmp.lt.f32.partialorder %v634_v14, 3.0 }
  0x6a   :  { %v294_v10 = vadd.f32 %v293_v23, %v292_v3  ;;  %v132_v17 = vadd.f32 1.0, %v128_v9  ;;  %v129_v19 = vadd.f32 1.0, %v125_v11  ;;  %vm109_vm3 = vcmp.lt.f32.partialorder %v630_v12, 3.0 }
  0x6b   :  { %389 = vlog2.f32 %v130_v16  ;;  %vm112_vm4 = vcmp.lt.f32.partialorder %v636_v15, 3.0  ;;  %v114_v47 = vsel %vm110_vm1, %v644_v22, 0.0  ;;  %v115_v50 = vsel %vm111_vm2, %v655_v26, 0.0 }
  0x6c   :  { %295 = vadd.xlane.f32.xlu1 %v294_v10  ;;  %391 = vlog2.f32 %v131_v24  ;;  %v113_v13 = vsel %vm109_vm3, %v639_v18, 0.0  ;;  %v116_v53 = vsel %vm112_vm4, %v657_v27, 0.0  ;;  %v183_v56 = vsel %vm165_vm11, %v114_v47, 0.0 }
  0x6d   :  { %393 = vlog2.f32 %v129_v19  ;;  %v182_v15 = vsel %vm165_vm11, %v113_v13, 0.0  ;;  %v185_v27 = vsel %vm165_vm11, %v115_v50, 0.0  ;;  %v187_v1 = vsel %vm165_vm11, %v116_v53, 0.0 }
  0x6e   :  { %395 = vlog2.f32 %v132_v17  ;;  %v184_v60 = vadd.f32 %v183_v56, %v182_v15 }
  0x70   :  { %311 = vadd.xlane.f32.xlu1 %v310_v25  ;;  %v186_v0 = vadd.f32 %v185_v27, %v184_v60 }
  0x72   :  { %v188_v23 = vadd.f32 %v187_v1, %v186_v0 }
  0x75   :  { %v390_v20 = vpop.eup %389 }
  0x76   :  { %v392_v21 = vpop.eup %391  ;;  %v136_v28 = vmul.f32 0.6931472, %v390_v20 }
  0x77   :  { %v394_v29 = vpop.eup %393  ;;  %v138_v30 = vmul.f32 0.6931472, %v392_v21 }
  0x78   :  { %v396_v33 = vpop.eup %395  ;;  %v134_v34 = vmul.f32 0.6931472, %v394_v29  ;;  %v142_v35 = vmul.f32 0.4, %v136_v28 }
  0x79   :  { %v140_v36 = vmul.f32 0.6931472, %v396_v33  ;;  %v143_v32 = vmul.f32 0.4, %v138_v30 }
  0x7a   :  { %v141_v37 = vmul.f32 0.4, %v134_v34  ;;  %v147_v38 = vmul.f32 1.442695, %v142_v35 }
  0x7b   :  { %v144_v39 = vmul.f32 0.4, %v140_v36  ;;  %v149_v40 = vmul.f32 1.442695, %v143_v32 }
  0x7c   :  { %v145_v41 = vmul.f32 1.442695, %v141_v37  ;;  %397 = vpow2.f32 %v147_v38 }
  0x7d   :  { %399 = vpow2.f32 %v149_v40  ;;  %v151_v42 = vmul.f32 1.442695, %v144_v39 }
  0x7e   :  { %401 = vpow2.f32 %v145_v41  ;;  %v320_v41 = vlaneseq }
  0x7f   :  { %403 = vpow2.f32 %v151_v42 }
  0x80   :  { %v321_v42 = vshrl.u32 %v320_v41, 7 }
  0x82   :  { %vm325_vm6 = vcmp.eq.s32.totalorder %v321_v42, 0  ;;  %vm329_vm7 = vcmp.eq.s32.totalorder %v321_v42, 1  ;;  %vm333_vm8 = vcmp.eq.s32.totalorder %v321_v42, 2  ;;  %vm337_vm10 = vcmp.eq.s32.totalorder %v321_v42, 3 }
  0x83   :  { %vm341_vm12 = vcmp.eq.s32.totalorder %v321_v42, 4  ;;  %vm344_vm14 = vcmp.eq.s32.totalorder %v321_v42, 5 }
  0x86   :  { %v398_v43 = vpop.eup %397 }
  0x87   :  { %v400_v44 = vpop.eup %399  ;;  %v370_v45 = vadd.f32 -1.0, %v398_v43  ;;  %v323_v43 = vand.u32 127, %v320_v41 }
  0x88   :  { %v402_v46 = vpop.eup %401  ;;  %v371_v48 = vadd.f32 -1.0, %v400_v44 }
  0x89   :  { %v404_v49 = vpop.eup %403  ;;  %v369_v51 = vadd.f32 -1.0, %v402_v46  ;;  %v158_v52 = vmul.f32 1.5, %v370_v45  ;;  %vm324_vm5 = vcmp.eq.s32.totalorder %v323_v43, 0 }
  0x8a   :  { %v372_v14 = vadd.f32 -1.0, %v404_v49  ;;  %v159_v54 = vmul.f32 1.5, %v371_v48  ;;  %vm326_vm9 = vmand %vm325_vm6, %vm324_vm5 }
  0x8b   :  { %v157_v55 = vmul.f32 1.5, %v369_v51  ;;  %v162_v12 = vmul.f32 %v158_v52, %v114_v47  ;;  %vm334_vm13 = vmand %vm333_vm8, %vm324_vm5 }
  0x8c   :  { %v160_v57 = vmul.f32 1.5, %v372_v14  ;;  %v163_v22 = vmul.f32 %v159_v54, %v115_v50  ;;  %vm338_vm15 = vmand %vm337_vm10, %vm324_vm5 }
  0x8d   :  { %v161_v58 = vmul.f32 %v157_v55, %v113_v13  ;;  %v167_v59 = vsel %vm165_vm11, %v162_v12, 0.0  ;;  %vm342_vm0 = vmand %vm341_vm12, %vm324_vm5 }
  0x8e   :  { %v164_v26 = vmul.f32 %v160_v57, %v116_v53  ;;  %v169_v18 = vsel %vm165_vm11, %v163_v22, 0.0  ;;  %vm345_vm1 = vmand %vm344_vm14, %vm324_vm5 }
  0x8f   :  { %v166_v61 = vsel %vm165_vm11, %v161_v58, 0.0 }
  0x90   :  { %v168_v62 = vadd.f32 %v167_v59, %v166_v61  ;;  %v171_v63 = vsel %vm165_vm11, %v164_v26, 0.0  ;;  %vm330_vm11 = vmand %vm329_vm7, %vm324_vm5 }
  0x92   :  { %v170_v31 = vadd.f32 %v169_v18, %v168_v62 }
  0x94   :  { %v172_v2 = vadd.f32 %v171_v63, %v170_v31 }
  0x96   :  { %173 = vadd.xlane.f32.xlu0 %v172_v2 }
  0x9a   :  { %189 = vadd.xlane.f32.xlu0 %v188_v23 }
  0xf9   :  { %v296_v3 = vpop.xlane.xlu1 %295 }
  0xfa   :  { %v297_v5 = vrot.slane %v296_v3, 4 }
  0xfc   :  { %v298_v7 = vadd.f32 %v297_v5, %v296_v3 }
  0xfd   :  { %v312_v4 = vpop.xlane.xlu1 %311 }
  0xfe   :  { %v313_v6 = vrot.slane %v312_v4, 4  ;;  %v299_v16 = vrot.slane %v298_v7, 2 }
 0x100   :  { %v314_v9 = vadd.f32 %v313_v6, %v312_v4  ;;  %v300_v28 = vadd.f32 %v299_v16, %v298_v7 }
 0x102   :  { %v315_v17 = vrot.slane %v314_v9, 2  ;;  %v301_v36 = vrot.slane %v300_v28, 1 }
 0x104   :  { %v316_v29 = vadd.f32 %v315_v17, %v314_v9  ;;  %v302_v39 = vadd.f32 %v301_v36, %v300_v28 }
 0x106   :  { %v317_v37 = vrot.slane %v316_v29, 1 }
 0x108   :  { %v318_v40 = vadd.f32 %v317_v37, %v316_v29 }
 0x123   :  { %v174_v8 = vpop.xlane.xlu0 %173 }
 0x124   :  { %v175_v10 = vrot.slane %v174_v8, 4 }
 0x126   :  { %v176_v11 = vadd.f32 %v175_v10, %v174_v8 }
 0x127   :  { %v190_v24 = vpop.xlane.xlu0 %189 }
 0x128   :  { %v177_v25 = vrot.slane %v176_v11, 2  ;;  %v191_v19 = vrot.slane %v190_v24, 4 }
 0x12a   :  { %v192_v20 = vadd.f32 %v191_v19, %v190_v24  ;;  %v178_v21 = vadd.f32 %v177_v25, %v176_v11 }
 0x12c   :  { %v193_v30 = vrot.slane %v192_v20, 2  ;;  %v179_v33 = vrot.slane %v178_v21, 1 }
 0x12e   :  { %v194_v34 = vadd.f32 %v193_v30, %v192_v20  ;;  %v180_v35 = vadd.f32 %v179_v33, %v178_v21 }
 0x130   :  { %373 = vpush %v180_v35  ;;  %v195_v32 = vrot.slane %v194_v34, 1 }
 0x132   :  { %v196_v38 = vadd.f32 %v195_v32, %v194_v34 }
 0x134   :  { %375 = vpush %v196_v38 }
 0x135   :  { %377 = vpush %v302_v39 }
 0x136   :  { %379 = vpush %v318_v40 }
 0x161   :  { %s374_s3 = spop %373 }
 0x162   :  { %v327_v44 = vstv %s374_s3 }
 0x163   :  { %v328_v45 = vsel %vm326_vm9, %v327_v44, 0.0 }
 0x165   :  { %s376_s27 = spop %375 }
 0x166   :  { %v331_v46 = vstv %s376_s27  ;;  %s378_s28 = spop %377 }
 0x167   :  { %v332_v47 = vsel %vm330_vm11, %v331_v46, %v328_v45  ;;  %v335_v48 = vstv %s378_s28  ;;  %s380_s12 = spop %379 }
 0x168   :  { %v336_v49 = vsel %vm334_vm13, %v335_v48, %v332_v47  ;;  %v339_v50 = vstv %s380_s12 }
 0x169   :  { %v340_v51 = vsel %vm338_vm15, %v339_v50, %v336_v49 }
 0x16a   :  { %v343_v52 = vsel %vm342_vm0, 0.0, %v340_v51 }
 0x16b   :  { %v346_v13 = vsel %vm345_vm1, 0.0, %v343_v52 }
 0x16c   :  { %347 = vst [vmem:[#allocation10] sm:$0xff] %v346_v13 }
 0x16d   :  { %504 = shalt.err (!%p501_p8)
}
 0x16e   :  { %s505_s17 = scalar_lea.hbm %s745_s4, 128 }
 0x16f   :  { %p506_p9 = scmp.ne.s32.totalorder %s745_s4, %s505_s17  ;;  %p509_p10 = scmp.lt.u32.totalorder %s505_s17, %s745_s4 }
 0x171   :  { %p511_p11 = pnand %p509_p10, %p506_p9 }
 0x173   :  { %514 = shalt.err (!%p511_p11)
}
 0x174   :  { %357 = dma.vmem_to_hbm [thread:$0]  %s355_s13, 128, %s745_s4, [#allocation4]  }
 0x175   :  { %521 = dma.done.wait [#allocation4], 128  }
 0x176   :  { %522 = vsyncadd [#allocation4], 4294967168 }
 0x177   :  { %361 = vsyncpa [#allocation3], 1 }
 0x178   :  { %362 = vsyncpa [#allocation6], 1 }
 0x179   :  { %363 = vsyncpa [#allocation9], 1 }
 0x17a   :  { %364 = vsyncpa [#allocation4], 1 }

</bundles_post_ra>
